<compile_context>
chip_gen: v6e
topology: v6e:2x2x1
jax: 0.10.0
libtpu: 0.0.40
codegen_flags: <defaults>
</compile_context>

<pallas_src>
import functools
import math

import jax
import jax.numpy as jnp
from jax.experimental import pallas as pl
from jax.experimental.pallas import tpu as pltpu

BN_EPS = 1e-5          # torch BatchNorm default
LANE = 128             # TPU lane width
SUBLANE = 8


def _round_up(n, m):
    return ((n + m - 1) // m) * m


def _pad_last(x, target):
    pad = target - x.shape[-1]
    if pad <= 0:
        return x
    widths = [(0, 0)] * (x.ndim - 1) + [(0, pad)]
    return jnp.pad(x, widths)


def _pad_2d(w, rows, cols):
    return jnp.pad(w, ((0, rows - w.shape[0]), (0, cols - w.shape[1])))


def _vmem_spec():
    return pl.BlockSpec(memory_space=pltpu.MemorySpace.VMEM)


def _pick_vmem_limit(needed_bytes):
    """Generation-aware VMEM budget: query physical capacity, leave headroom."""
    cap = 64 * 1024 * 1024                      # conservative fallback (v7x per-TC)
    try:
        info = pltpu.get_tpu_info()
        cap_attr = getattr(info, "vmem_capacity_bytes", None)
        if cap_attr:
            cap = int(cap_attr)
    except Exception:
        pass
    want = max(4 * needed_bytes, 16 * 1024 * 1024)   # inputs/outputs + intermediates
    return int(min(want, (cap * 3) // 4))


# --------------------------- fused Pallas kernel -----------------------------

def _fused_forward_kernel(num_gcn, return_hidden, *refs):
    # refs = (a_hat, x, w_in, b_in, [w, b, gamma, beta] * num_gcn,
    #         wo1, bo1, wo2, bo2, out_ref[, hid_ref])
    a_ref, x_ref, w_in_ref, b_in_ref = refs[0:4]
    idx = 4
    gcn_refs = []
    for _ in range(num_gcn):
        gcn_refs.append(refs[idx:idx + 4])
        idx += 4
    wo1_ref, bo1_ref, wo2_ref, bo2_ref = refs[idx:idx + 4]
    idx += 4
    out_ref = refs[idx]
    hid_ref = refs[idx + 1] if return_hidden else None

    # A_hat (bf16) pulled into registers ONCE, reused by every GCN layer.
    a = a_ref[...]
    inv_n = jnp.float32(1.0 / a.shape[0])

    # self.input : Linear(in_dim -> hidden_channels[0])   (bf16 MXU, f32 acc)
    h = jnp.dot(x_ref[...].astype(jnp.bfloat16), w_in_ref[...],
                preferred_element_type=jnp.float32) + b_in_ref[...]

    for i, (w_ref, b_ref, g_ref, beta_ref) in enumerate(gcn_refs):
        # GCNConv:  h = A_hat @ (h W) + b        (both dots bf16 -> f32 acc)
        hw = jnp.dot(h.astype(jnp.bfloat16), w_ref[...],
                     preferred_element_type=jnp.float32)
        h = jnp.dot(a, hw.astype(jnp.bfloat16),
                    preferred_element_type=jnp.float32) + b_ref[...]

        # BatchNorm (training-mode batch stats over the node dim), one pass:
        # var = E[h^2] - mean^2; affine folded into (scale, shift) -> single FMA.
        # TODO(synk): eval-mode running_mean/running_var not plumbed in.
        s1 = jnp.sum(h, axis=0, keepdims=True)
        s2 = jnp.sum(h * h, axis=0, keepdims=True)
        mean = s1 * inv_n
        var = s2 * inv_n - mean * mean
        scale = g_ref[...] * jax.lax.rsqrt(var + BN_EPS)
        shift = beta_ref[...] - mean * scale
        h = h * scale + shift

        if i < num_gcn - 1:                # activation on all but the last GCN layer
            h = jnp.maximum(h, 0.0)
        # dropout = 0.0 -> Identity

    if return_hidden:
        hid_ref[...] = h.astype(hid_ref.dtype)

    # TODO(synk): exact OutputLayer definition unavailable; implemented as
    #             Linear(hidden -> end_channels) -> ReLU -> Linear(end -> out).
    o = jnp.dot(h.astype(jnp.bfloat16), wo1_ref[...],
                preferred_element_type=jnp.float32) + bo1_ref[...]
    o = jnp.maximum(o, 0.0)
    o = jnp.dot(o.astype(jnp.bfloat16), wo2_ref[...],
                preferred_element_type=jnp.float32) + bo2_ref[...]
    out_ref[...] = o.astype(out_ref.dtype)


# --------------------------- JAX glue ----------------------------------------

def normalized_adjacency(edge_index, n):
    """Dense D^-1/2 (A + I) D^-1/2 in bf16, A[dst, src] = 1 for each edge src->dst."""
    # TODO(synk): dense O(N^2) adjacency; use a sparse/segment formulation and a
    #             tiled grid if N grows past a few thousand.
    src, dst = edge_index[0], edge_index[1]
    a = jnp.zeros((n, n), jnp.float32).at[dst, src].add(1.0)
    a = a + jnp.eye(n, dtype=jnp.float32)          # add self loops
    deg = a.sum(axis=1)
    dinv = jax.lax.rsqrt(deg)
    return (a * dinv[:, None] * dinv[None, :]).astype(jnp.bfloat16)


def _init_linear(key, fan_in, fan_out, pad_in, pad_out):
    k1, k2 = jax.random.split(key)
    bound = 1.0 / math.sqrt(fan_in)
    w = jax.random.uniform(k1, (fan_in, fan_out), jnp.float32, -bound, bound)
    b = jax.random.uniform(k2, (1, fan_out), jnp.float32, -bound, bound)
    # Weights pre-cast to bf16 (MXU-native, halves their DMA); biases stay f32
    # because they are added to the f32 accumulator.
    return _pad_2d(w, pad_in, pad_out).astype(jnp.bfloat16), _pad_last(b, pad_out)


def init_params(key, in_dim, hidden_channels, end_channels, out_channels):
    num_gcn = len(hidden_channels) - 1
    keys = jax.random.split(key, 2 + num_gcn)
    # K / intermediate dims: sublane (8) alignment only. Stored output: lane (128).
    p_in = _round_up(in_dim, SUBLANE)
    p_hid = [_round_up(c, SUBLANE) for c in hidden_channels]
    p_end = _round_up(end_channels, SUBLANE)
    p_out = _round_up(out_channels, LANE)

    params = {"out_channels": out_channels, "hidden_last": hidden_channels[-1]}
    params["input_w"], params["input_b"] = _init_linear(
        keys[0], in_dim, hidden_channels[0], p_in, p_hid[0])
    params["gcn"] = []
    for i in range(num_gcn):
        w, b = _init_linear(keys[1 + i], hidden_channels[i], hidden_channels[i + 1],
                            p_hid[i], p_hid[i + 1])
        gamma = _pad_last(jnp.ones((1, hidden_channels[i + 1]), jnp.float32),
                          p_hid[i + 1])
        beta = jnp.zeros((1, p_hid[i + 1]), jnp.float32)
        params["gcn"].append((w, b, gamma, beta))
    kw1, kw2 = jax.random.split(keys[-1])
    params["out_w1"], params["out_b1"] = _init_linear(
        kw1, hidden_channels[-1], end_channels, p_hid[-1], p_end)
    params["out_w2"], params["out_b2"] = _init_linear(
        kw2, end_channels, out_channels, p_end, p_out)
    return params


def gcn_forward(params, X, edge_index, return_hidden=False):
    edge_index = edge_index[:2]                    # matches `edge_index = edge_index[:2]`
    n = X.shape[0]
    a_hat = normalized_adjacency(edge_index, n)    # bf16
    x_pad = _pad_last(X.astype(jnp.float32), params["input_w"].shape[0])
    num_gcn = len(params["gcn"])

    inputs = [a_hat, x_pad, params["input_w"], params["input_b"]]
    for layer in params["gcn"]:
        inputs.extend(layer)
    inputs.extend([params["out_w1"], params["out_b1"],
                   params["out_w2"], params["out_b2"]])

    out_lane = params["out_w2"].shape[1]
    hid_lane = params["gcn"][-1][0].shape[1] if num_gcn else params["input_w"].shape[1]

    out_shapes = [jax.ShapeDtypeStruct((n, out_lane), jnp.float32)]
    out_specs = [_vmem_spec()]
    if return_hidden:
        out_shapes.append(jax.ShapeDtypeStruct((n, hid_lane), jnp.float32))
        out_specs.append(_vmem_spec())

    needed = sum(int(a.size) * a.dtype.itemsize for a in inputs)
    needed += sum(int(math.prod(s.shape)) * jnp.dtype(s.dtype).itemsize
                  for s in out_shapes)

    results = pl.pallas_call(
        functools.partial(_fused_forward_kernel, num_gcn, return_hidden),
        out_shape=tuple(out_shapes),
        in_specs=[_vmem_spec() for _ in inputs],
        out_specs=tuple(out_specs),
        compiler_params=pltpu.CompilerParams(
            vmem_limit_bytes=_pick_vmem_limit(needed)),
    )(*inputs)

    out = results[0][:, :params["out_channels"]]
    if return_hidden:
        return out, results[1][:, :params["hidden_last"]]
    return out


# --------------------------- main --------------------------------------------

if __name__ == "__main__":
    N = 16                      # number of graph nodes
    IN_DIM = 8
    HIDDEN = [32, 32, 32]       # -> 2 GCNConv layers
    END_CHANNELS = 16
    OUT_CHANNELS = 1
    # n_sequences / task_type only affect the unavailable OutputLayer internals.

    key = jax.random.PRNGKey(0)
    kx, kp = jax.random.split(key)

    X = jax.random.normal(kx, (N, IN_DIM), jnp.float32)

    # deterministic bidirectional ring graph; 3rd row mimics edge attrs sliced off
    src = jnp.arange(N, dtype=jnp.int32)
    dst = (src + 1) % N
    edge_index = jnp.stack([
        jnp.concatenate([src, dst]),
        jnp.concatenate([dst, src]),
        jnp.zeros(2 * N, jnp.int32),
    ])

    params = init_params(kp, IN_DIM, HIDDEN, END_CHANNELS, OUT_CHANNELS)

    out = gcn_forward(params, X, edge_index)
    jax.block_until_ready(out)
    assert out.shape == (N, OUT_CHANNELS)
    assert bool(jnp.all(jnp.isfinite(out)))

    out2, hid = gcn_forward(params, X, edge_index, return_hidden=True)
    jax.block_until_ready((out2, hid))
    assert out2.shape == (N, OUT_CHANNELS) and hid.shape == (N, HIDDEN[-1])

    print("KERNEL_OK")
</pallas_src>

<mosaic_0001>
module attributes {stable_mosaic.version = 11 : i64} {
  func.func @_fused_forward_kernel(%arg0: memref<16x16xbf16, #tpu.memory_space<vmem>>, %arg1: memref<16x8xf32, #tpu.memory_space<vmem>>, %arg2: memref<8x32xbf16, #tpu.memory_space<vmem>>, %arg3: memref<1x32xf32, #tpu.memory_space<vmem>>, %arg4: memref<32x32xbf16, #tpu.memory_space<vmem>>, %arg5: memref<1x32xf32, #tpu.memory_space<vmem>>, %arg6: memref<1x32xf32, #tpu.memory_space<vmem>>, %arg7: memref<1x32xf32, #tpu.memory_space<vmem>>, %arg8: memref<32x32xbf16, #tpu.memory_space<vmem>>, %arg9: memref<1x32xf32, #tpu.memory_space<vmem>>, %arg10: memref<1x32xf32, #tpu.memory_space<vmem>>, %arg11: memref<1x32xf32, #tpu.memory_space<vmem>>, %arg12: memref<32x16xbf16, #tpu.memory_space<vmem>>, %arg13: memref<1x16xf32, #tpu.memory_space<vmem>>, %arg14: memref<16x128xbf16, #tpu.memory_space<vmem>>, %arg15: memref<1x128xf32, #tpu.memory_space<vmem>>, %arg16: memref<16x128xf32, #tpu.memory_space<vmem>>) attributes {dimension_semantics = [], scalar_prefetch = 0 : i64, scratch_operands = 0 : i64, tpu.core_type = #tpu.core_type<tc>} {
    %c0 = arith.constant 0 : index
    %c0_0 = arith.constant 0 : index
    %0 = vector.load %arg0[%c0, %c0_0] : memref<16x16xbf16, #tpu.memory_space<vmem>>, vector<16x16xbf16>
    %c0_1 = arith.constant 0 : index
    %c0_2 = arith.constant 0 : index
    %1 = vector.load %arg1[%c0_1, %c0_2] : memref<16x8xf32, #tpu.memory_space<vmem>>, vector<16x8xf32>
    %2 = arith.truncf %1 : vector<16x8xf32> to vector<16x8xbf16>
    %c0_3 = arith.constant 0 : index
    %c0_4 = arith.constant 0 : index
    %3 = vector.load %arg2[%c0_3, %c0_4] : memref<8x32xbf16, #tpu.memory_space<vmem>>, vector<8x32xbf16>
    %cst = arith.constant dense<0.000000e+00> : vector<16x32xf32>
    %4 = tpu.matmul %2, %3, %cst {dimension_numbers = #tpu.dot_dimension_numbers<[1], [0], [0], [1], [0, 0, 1, 1], [], []>} : vector<16x8xbf16>, vector<8x32xbf16>, vector<16x32xf32> -> vector<16x32xf32>
    %c0_5 = arith.constant 0 : index
    %c0_6 = arith.constant 0 : index
    %5 = vector.load %arg3[%c0_5, %c0_6] : memref<1x32xf32, #tpu.memory_space<vmem>>, vector<1x32xf32>
    %6 = vector.broadcast %5 : vector<1x32xf32> to vector<16x32xf32>
    %7 = arith.addf %4, %6 : vector<16x32xf32>
    %8 = arith.truncf %7 : vector<16x32xf32> to vector<16x32xbf16>
    %c0_7 = arith.constant 0 : index
    %c0_8 = arith.constant 0 : index
    %9 = vector.load %arg4[%c0_7, %c0_8] : memref<32x32xbf16, #tpu.memory_space<vmem>>, vector<32x32xbf16>
    %cst_9 = arith.constant dense<0.000000e+00> : vector<16x32xf32>
    %10 = tpu.matmul %8, %9, %cst_9 {dimension_numbers = #tpu.dot_dimension_numbers<[1], [0], [0], [1], [0, 0, 1, 1], [], []>} : vector<16x32xbf16>, vector<32x32xbf16>, vector<16x32xf32> -> vector<16x32xf32>
    %11 = arith.truncf %10 : vector<16x32xf32> to vector<16x32xbf16>
    %cst_10 = arith.constant dense<0.000000e+00> : vector<16x32xf32>
    %12 = tpu.matmul %0, %11, %cst_10 {dimension_numbers = #tpu.dot_dimension_numbers<[1], [0], [0], [1], [0, 0, 1, 1], [], []>} : vector<16x16xbf16>, vector<16x32xbf16>, vector<16x32xf32> -> vector<16x32xf32>
    %c0_11 = arith.constant 0 : index
    %c0_12 = arith.constant 0 : index
    %13 = vector.load %arg5[%c0_11, %c0_12] : memref<1x32xf32, #tpu.memory_space<vmem>>, vector<1x32xf32>
    %14 = vector.broadcast %13 : vector<1x32xf32> to vector<16x32xf32>
    %15 = arith.addf %12, %14 : vector<16x32xf32>
    %cst_13 = arith.constant dense<0.000000e+00> : vector<32xf32>
    %16 = vector.multi_reduction <add>, %15, %cst_13 [0] : vector<16x32xf32> to vector<32xf32>
    %17 = vector.shape_cast %16 : vector<32xf32> to vector<1x32xf32>
    %18 = arith.mulf %15, %15 : vector<16x32xf32>
    %cst_14 = arith.constant dense<0.000000e+00> : vector<32xf32>
    %19 = vector.multi_reduction <add>, %18, %cst_14 [0] : vector<16x32xf32> to vector<32xf32>
    %20 = vector.shape_cast %19 : vector<32xf32> to vector<1x32xf32>
    %cst_15 = arith.constant 6.250000e-02 : f32
    %21 = vector.broadcast %cst_15 : f32 to vector<1x32xf32>
    %22 = arith.mulf %17, %21 : vector<1x32xf32>
    %cst_16 = arith.constant 6.250000e-02 : f32
    %23 = vector.broadcast %cst_16 : f32 to vector<1x32xf32>
    %24 = arith.mulf %20, %23 : vector<1x32xf32>
    %25 = arith.mulf %22, %22 : vector<1x32xf32>
    %26 = arith.subf %24, %25 : vector<1x32xf32>
    %c0_17 = arith.constant 0 : index
    %c0_18 = arith.constant 0 : index
    %27 = vector.load %arg6[%c0_17, %c0_18] : memref<1x32xf32, #tpu.memory_space<vmem>>, vector<1x32xf32>
    %cst_19 = arith.constant 9.99999974E-6 : f32
    %28 = vector.broadcast %cst_19 : f32 to vector<1x32xf32>
    %29 = arith.addf %26, %28 : vector<1x32xf32>
    %30 = math.rsqrt %29 : vector<1x32xf32>
    %31 = arith.mulf %27, %30 : vector<1x32xf32>
    %c0_20 = arith.constant 0 : index
    %c0_21 = arith.constant 0 : index
    %32 = vector.load %arg7[%c0_20, %c0_21] : memref<1x32xf32, #tpu.memory_space<vmem>>, vector<1x32xf32>
    %33 = arith.mulf %22, %31 : vector<1x32xf32>
    %34 = arith.subf %32, %33 : vector<1x32xf32>
    %35 = vector.broadcast %31 : vector<1x32xf32> to vector<16x32xf32>
    %36 = arith.mulf %15, %35 : vector<16x32xf32>
    %37 = vector.broadcast %34 : vector<1x32xf32> to vector<16x32xf32>
    %38 = arith.addf %36, %37 : vector<16x32xf32>
    %cst_22 = arith.constant 0.000000e+00 : f32
    %39 = vector.broadcast %cst_22 : f32 to vector<16x32xf32>
    %40 = arith.maximumf %38, %39 : vector<16x32xf32>
    %41 = arith.truncf %40 : vector<16x32xf32> to vector<16x32xbf16>
    %c0_23 = arith.constant 0 : index
    %c0_24 = arith.constant 0 : index
    %42 = vector.load %arg8[%c0_23, %c0_24] : memref<32x32xbf16, #tpu.memory_space<vmem>>, vector<32x32xbf16>
    %cst_25 = arith.constant dense<0.000000e+00> : vector<16x32xf32>
    %43 = tpu.matmul %41, %42, %cst_25 {dimension_numbers = #tpu.dot_dimension_numbers<[1], [0], [0], [1], [0, 0, 1, 1], [], []>} : vector<16x32xbf16>, vector<32x32xbf16>, vector<16x32xf32> -> vector<16x32xf32>
    %44 = arith.truncf %43 : vector<16x32xf32> to vector<16x32xbf16>
    %cst_26 = arith.constant dense<0.000000e+00> : vector<16x32xf32>
    %45 = tpu.matmul %0, %44, %cst_26 {dimension_numbers = #tpu.dot_dimension_numbers<[1], [0], [0], [1], [0, 0, 1, 1], [], []>} : vector<16x16xbf16>, vector<16x32xbf16>, vector<16x32xf32> -> vector<16x32xf32>
    %c0_27 = arith.constant 0 : index
    %c0_28 = arith.constant 0 : index
    %46 = vector.load %arg9[%c0_27, %c0_28] : memref<1x32xf32, #tpu.memory_space<vmem>>, vector<1x32xf32>
    %47 = vector.broadcast %46 : vector<1x32xf32> to vector<16x32xf32>
    %48 = arith.addf %45, %47 : vector<16x32xf32>
    %cst_29 = arith.constant dense<0.000000e+00> : vector<32xf32>
    %49 = vector.multi_reduction <add>, %48, %cst_29 [0] : vector<16x32xf32> to vector<32xf32>
    %50 = vector.shape_cast %49 : vector<32xf32> to vector<1x32xf32>
    %51 = arith.mulf %48, %48 : vector<16x32xf32>
    %cst_30 = arith.constant dense<0.000000e+00> : vector<32xf32>
    %52 = vector.multi_reduction <add>, %51, %cst_30 [0] : vector<16x32xf32> to vector<32xf32>
    %53 = vector.shape_cast %52 : vector<32xf32> to vector<1x32xf32>
    %cst_31 = arith.constant 6.250000e-02 : f32
    %54 = vector.broadcast %cst_31 : f32 to vector<1x32xf32>
    %55 = arith.mulf %50, %54 : vector<1x32xf32>
    %cst_32 = arith.constant 6.250000e-02 : f32
    %56 = vector.broadcast %cst_32 : f32 to vector<1x32xf32>
    %57 = arith.mulf %53, %56 : vector<1x32xf32>
    %58 = arith.mulf %55, %55 : vector<1x32xf32>
    %59 = arith.subf %57, %58 : vector<1x32xf32>
    %c0_33 = arith.constant 0 : index
    %c0_34 = arith.constant 0 : index
    %60 = vector.load %arg10[%c0_33, %c0_34] : memref<1x32xf32, #tpu.memory_space<vmem>>, vector<1x32xf32>
    %cst_35 = arith.constant 9.99999974E-6 : f32
    %61 = vector.broadcast %cst_35 : f32 to vector<1x32xf32>
    %62 = arith.addf %59, %61 : vector<1x32xf32>
    %63 = math.rsqrt %62 : vector<1x32xf32>
    %64 = arith.mulf %60, %63 : vector<1x32xf32>
    %c0_36 = arith.constant 0 : index
    %c0_37 = arith.constant 0 : index
    %65 = vector.load %arg11[%c0_36, %c0_37] : memref<1x32xf32, #tpu.memory_space<vmem>>, vector<1x32xf32>
    %66 = arith.mulf %55, %64 : vector<1x32xf32>
    %67 = arith.subf %65, %66 : vector<1x32xf32>
    %68 = vector.broadcast %64 : vector<1x32xf32> to vector<16x32xf32>
    %69 = arith.mulf %48, %68 : vector<16x32xf32>
    %70 = vector.broadcast %67 : vector<1x32xf32> to vector<16x32xf32>
    %71 = arith.addf %69, %70 : vector<16x32xf32>
    %72 = arith.truncf %71 : vector<16x32xf32> to vector<16x32xbf16>
    %c0_38 = arith.constant 0 : index
    %c0_39 = arith.constant 0 : index
    %73 = vector.load %arg12[%c0_38, %c0_39] : memref<32x16xbf16, #tpu.memory_space<vmem>>, vector<32x16xbf16>
    %cst_40 = arith.constant dense<0.000000e+00> : vector<16x16xf32>
    %74 = tpu.matmul %72, %73, %cst_40 {dimension_numbers = #tpu.dot_dimension_numbers<[1], [0], [0], [1], [0, 0, 1, 1], [], []>} : vector<16x32xbf16>, vector<32x16xbf16>, vector<16x16xf32> -> vector<16x16xf32>
    %c0_41 = arith.constant 0 : index
    %c0_42 = arith.constant 0 : index
    %75 = vector.load %arg13[%c0_41, %c0_42] : memref<1x16xf32, #tpu.memory_space<vmem>>, vector<1x16xf32>
    %76 = vector.broadcast %75 : vector<1x16xf32> to vector<16x16xf32>
    %77 = arith.addf %74, %76 : vector<16x16xf32>
    %cst_43 = arith.constant 0.000000e+00 : f32
    %78 = vector.broadcast %cst_43 : f32 to vector<16x16xf32>
    %79 = arith.maximumf %77, %78 : vector<16x16xf32>
    %80 = arith.truncf %79 : vector<16x16xf32> to vector<16x16xbf16>
    %c0_44 = arith.constant 0 : index
    %c0_45 = arith.constant 0 : index
    %81 = vector.load %arg14[%c0_44, %c0_45] : memref<16x128xbf16, #tpu.memory_space<vmem>>, vector<16x128xbf16>
    %cst_46 = arith.constant dense<0.000000e+00> : vector<16x128xf32>
    %82 = tpu.matmul %80, %81, %cst_46 {dimension_numbers = #tpu.dot_dimension_numbers<[1], [0], [0], [1], [0, 0, 1, 1], [], []>} : vector<16x16xbf16>, vector<16x128xbf16>, vector<16x128xf32> -> vector<16x128xf32>
    %c0_47 = arith.constant 0 : index
    %c0_48 = arith.constant 0 : index
    %83 = vector.load %arg15[%c0_47, %c0_48] : memref<1x128xf32, #tpu.memory_space<vmem>>, vector<1x128xf32>
    %84 = vector.broadcast %83 : vector<1x128xf32> to vector<16x128xf32>
    %85 = arith.addf %82, %84 : vector<16x128xf32>
    %c0_49 = arith.constant 0 : index
    %c0_50 = arith.constant 0 : index
    %86 = vector.load %arg16[%c0_49, %c0_50] : memref<16x128xf32, #tpu.memory_space<vmem>>, vector<16x128xf32>
    tpu.vector_store %arg16[%c0_49, %c0_50], %85 {strides = array<i32>} : memref<16x128xf32, #tpu.memory_space<vmem>>, vector<16x128xf32>,
    return
  }
}

</mosaic_0001>

<bundles_post_ra>
// kernel: tpu_custom_call.1
= control target key start
LH: loop header
LB: loop body
LE: loop exit
PB: predicated region body
PF: predicated region fallthrough
CT: control target
= control target key end

     0   :  { %s990_s0 = inlined_call_operand.vmem [shape: bf16[16,16], index: 0, kind: input, shape index: {}]   ;;  %s991_s1 = inlined_call_operand.vmem [shape: f32[16,8], index: 1, kind: input, shape index: {}]   ;;  %s992_s2 = inlined_call_operand.hbm [shape: bf16[8,32], index: 2, kind: input, shape index: {}]   ;;  %s993_s3 = inlined_call_operand.vmem [shape: f32[1,32], index: 3, kind: input, shape index: {}]   ;;  %s994_s4 = inlined_call_operand.vmem [shape: bf16[32,32], index: 4, kind: input, shape index: {}]   ;;  %s995_s5 = inlined_call_operand.hbm [shape: f32[1,32], index: 5, kind: input, shape index: {}]   ;;  %s996_s6 = inlined_call_operand.vmem [shape: f32[1,32], index: 6, kind: input, shape index: {}]   ;;  %s997_s7 = inlined_call_operand.vmem [shape: f32[1,32], index: 7, kind: input, shape index: {}]   ;;  %s998_s8 = inlined_call_operand.vmem [shape: bf16[32,32], index: 8, kind: input, shape index: {}]   ;;  %s999_s9 = inlined_call_operand.vmem [shape: f32[1,32], index: 9, kind: input, shape index: {}]   ;;  %s1000_s10 = inlined_call_operand.vmem [shape: f32[1,32], index: 10, kind: input, shape index: {}]   ;;  %s1001_s11 = inlined_call_operand.vmem [shape: f32[1,32], index: 11, kind: input, shape index: {}]   ;;  %s1002_s12 = inlined_call_operand.vmem [shape: bf16[32,16], index: 12, kind: input, shape index: {}]   ;;  %s1003_s13 = inlined_call_operand.vmem [shape: f32[1,16], index: 13, kind: input, shape index: {}]   ;;  %s1004_s14 = inlined_call_operand.vmem [shape: bf16[16,128], index: 14, kind: input, shape index: {}]   ;;  %s1005_s15 = inlined_call_operand.vmem [shape: f32[1,128], index: 15, kind: input, shape index: {}]   ;;  %s1006_s16 = inlined_call_operand.hbm [shape: f32[16,128], index: 16, kind: output, shape index: {}]  }
   0x1   :  { %1007 = sst [smem:[#allocation11_spill]] %s990_s0 }
   0x2   :  { %21 = vsyncpa [#allocation3], 0 }
   0x3   :  { %22 = vsyncpa [#allocation6], 0 }
   0x4   :  { %23 = vsyncpa [#allocation4], 0  ;;  %s787_s21 = smov [#allocation2]   ;;  %s788_s23 = smov [#allocation5]  }
   0x5   :  { %s34_s22 = sshll.u32 %s787_s21, 4  ;;  %s48_s24 = sshll.u32 %s788_s23, 4  ;;  %s35_s22 = int_to_ptr.vmem [resolvable:$true] %s34_s22  ;;  %s49_s24 = int_to_ptr.vmem [resolvable:$true] %s48_s24 }
   0x6   :  { %s729_s25 = scalar_lea.vmem %s35_s22, 64  ;;  %p734_p1 = scmp.lt.s32.totalorder %s35_s22, %s35_s22 }
   0x7   :  { %p730_p0 = scmp.ne.s32.totalorder %s35_s22, %s729_s25  ;;  %p735_p2 = scmp.lt.s32.totalorder %s729_s25, %s729_s25 }
   0x9   :  { %p736_p3 = por %p735_p2, %p734_p1 }
   0xb   :  { %p737_p4 = pnand %p736_p3, %p730_p0 }
   0xd   :  { %740 = shalt.err (!%p737_p4)
}
   0xe   :  { %37 = dma.hbm_to_vmem [thread:$0]  %s992_s2, 64, %s35_s22, [#allocation3]  }
   0xf   :  { %s749_s28 = scalar_lea.vmem %s49_s24, 16  ;;  %s753_s29 = scalar_lea.vmem %s49_s24, 32 }
  0x10   :  { %p750_p5 = scmp.ne.s32.totalorder %s49_s24, %s749_s28  ;;  %p754_p6 = scmp.lt.s32.totalorder %s49_s24, %s49_s24 }
  0x11   :  { %p755_p7 = scmp.lt.s32.totalorder %s753_s29, %s749_s28 }
  0x13   :  { %p756_p8 = por %p755_p7, %p754_p6 }
  0x15   :  { %p757_p9 = pnand %p756_p8, %p750_p5 }
  0x17   :  { %760 = shalt.err (!%p757_p9)
}
  0x18   :  { %51 = dma.hbm_to_vmem [thread:$0]  %s995_s5, 16, %s49_s24, [#allocation6]  }
  0x19   :  { %781 = dma.done.wait [#allocation3], 64  }
  0x1a   :  { %782 = vsyncadd [#allocation3], 4294967232 }
  0x1b   :  { %783 = dma.done.wait [#allocation6], 16  }
  0x1c   :  { %784 = vsyncadd [#allocation6], 4294967280  ;;  %v789_v0 = vmov 0.0   ;;  %vm790_vm0 = vmmov 0   ;;  %vm96_vm1 = vcmask 1043456   ;;  %v81_v2 = vld [vmem:[%s991_s1] sm:$0xff]  ;;  %v293_v56 = vlaneseq }
  0x1d   :  { %654 = vmatprep.subr.bf16.mxu0 %v789_v0  ;;  %656 = vmatprep.mubr.msk.bf16.mxu0 %vm790_vm0, %v789_v0  ;;  %v84_v1 = vld [vmem:[#allocation2] sm:$0xf]  ;;  %v82_v3 = vld [vmem:[%s991_s1 + $0x8] sm:$0xff]  ;;  %vm92_vm2 = vcmask 64512   ;;  %vm158_vm3 = vcmask 261120   ;;  %vm216_vm4 = vcmask 130048  }
  0x1e   :  { %660 = vmatprep.subr.bf16.mxu1 %v789_v0  ;;  %664 = vmatprep.mubr.msk.bf16.mxu1 %vm790_vm0, %v789_v0  ;;  %v98_v4 = vsel %vm96_vm1, %v84_v1, 0  ;;  %v83_v5 = vpack.c.bf16 %v82_v3, %v81_v2  ;;  %v709_v6 = vld [vmem:[%s994_s4 + $0x8] sm:$0xff]   ;;  %v710_v7 = vld [vmem:[%s994_s4] sm:$0xff]   ;;  %v294_v57 = vshrl.u32 %v293_v56, 7 }
  0x1f   :  { %655 = vmatpush3.bf16.msra.mxu0 %v98_v4  ;;  %661 = vmatpush3.bf16.msra.mxu1 %v709_v6  ;;  %v617_v9 = vld [vmem:[%s993_s3] ss:$0 sm:$0xff]  ;;  %s1008_s3 = sld [smem:[#allocation11_spill]]  ;;  %v712_v22 = vld [vmem:[%s998_s8 + $0x8] sm:$0xff]   ;;  %v622_v24 = vld [vmem:[#allocation5] ss:$0 sm:$0xff] }
  0x20   :  { %668 = vmatprep.subr.bf16.mxu0 %v789_v0  ;;  %662 = vmatprep.subr.bf16.mxu1 %v789_v0  ;;  %v713_v23 = vld [vmem:[%s998_s8] sm:$0xff]   ;;  %v939_v59 = vsub.s32 0, %v294_v57 }
  0x21   :  { %v285_v58 = vld [vmem:[%s996_s6] sm:$0x1] }
  0x22   :  { %657 = vmatmul.mubr.msk.bf16.vlgmr.msra.gmra.mxu0 %vm92_vm2, %v83_v5  ;;  %v289_v62 = vld [vmem:[%s997_s7] sm:$0x1] }
  0x23   :  { %670 = vmatprep.mubr.msk.bf16.mxu0 %vm790_vm0, %v789_v0  ;;  %663 = vmatpush3.bf16.msra.mxu1 %v710_v7 }
  0x24   :  { %674 = vmatprep.subr.bf16.mxu1 %v789_v0 }
  0x25   :  { %v917_v21 = vld [vmem:[%s1008_s3] sm:$0xff]  }
  0xe2   :  { %v134_v8 = vpop.f32.mrf.mxu0 }
  0xe3   :  { %v135_v12 = vadd.f32 %v617_v9, %v134_v8 }
  0xe4   :  { %v658_v10 = vpop.f32.mrf.mxu0 }
  0xe6   :  { %v137_v11 = vpop.f32.mrf.mxu0 }
  0xe7   :  { %v138_v13 = vadd.f32 %v617_v9, %v137_v11 }
  0xe8   :  { %v659_v14 = vpop.f32.mrf.mxu0 }
  0xe9   :  { %v141_v15 = vpack.c.bf16 %v138_v13, %v135_v12 }
  0xeb   :  { %665 = vmatmul.mubr.msk.bf16.vlgmr.msra.gmra.mxu1 %vm158_vm3, %v141_v15 }
  0xec   :  { %678 = vmatprep.mubr.msk.bf16.mxu1 %vm790_vm0, %v789_v0  ;;  %675 = vmatpush3.bf16.msra.mxu1 %v712_v22 }
  0xed   :  { %676 = vmatprep.subr.bf16.mxu1 %v789_v0 }
  0xf0   :  { %677 = vmatpush3.bf16.msra.mxu1 %v713_v23 }
  0xf1   :  { %688 = vmatprep.subr.bf16.mxu1 %v789_v0 }
 0x1ab   :  { %v196_v16 = vpop.f32.mrf.mxu1 }
 0x1ad   :  { %v666_v17 = vpop.f32.mrf.mxu1 }
 0x1ae   :  { %v715_v17 = vld [vmem:[%s1002_s12] sm:$0xff]  }
 0x1af   :  { %v199_v18 = vpop.f32.mrf.mxu1 }
 0x1b0   :  { %v203_v19 = vpack.c.bf16 %v199_v18, %v196_v16  ;;  %v714_v16 = vld [vmem:[%s1002_s12 + $0x8] sm:$0xff]   ;;  %v628_v18 = vld [vmem:[%s999_s9] ss:$0 sm:$0xff] }
 0x1b1   :  { %v667_v20 = vpop.f32.mrf.mxu1 }
 0x1b2   :  { %669 = vmatpush3.bf16.msra.mxu0 %v203_v19 }
 0x1b3   :  { %682 = vmatprep.subr.bf16.mxu0 %v789_v0 }
 0x1b5   :  { %671 = vmatmul.mubr.msk.bf16.vlgmr.msra.gmra.mxu0 %vm216_vm4, %v917_v21 }
 0x1b6   :  { %684 = vmatprep.mubr.msk.bf16.mxu0 %vm790_vm0, %v789_v0 }
 0x275   :  { %v254_v25 = vpop.f32.mrf.mxu0 }
 0x276   :  { %v255_v26 = vadd.f32 %v622_v24, %v254_v25 }
 0x277   :  { %v672_v27 = vpop.f32.mrf.mxu0 }
 0x278   :  { %v270_v29 = vmul.f32 %v255_v26, %v255_v26  ;;  %v261_v32 = vsel %vm158_vm3, %v255_v26, 0.0 }
 0x279   :  { %v257_v28 = vpop.f32.mrf.mxu0 }
 0x27a   :  { %v258_v30 = vadd.f32 %v622_v24, %v257_v28  ;;  %v272_v36 = vsel %vm158_vm3, %v270_v29, 0.0 }
 0x27b   :  { %v673_v31 = vpop.f32.mrf.mxu0 }
 0x27c   :  { %v262_v33 = vsel %vm158_vm3, %v258_v30, 0.0  ;;  %v271_v34 = vmul.f32 %v258_v30, %v258_v30 }
 0x27d   :  { %v263_v35 = vadd.f32 %v262_v33, %v261_v32 }
 0x27e   :  { %v273_v37 = vsel %vm158_vm3, %v271_v34, 0.0 }
 0x27f   :  { %v264_v38 = vrot.slane %v263_v35, 4  ;;  %v274_v39 = vadd.f32 %v273_v37, %v272_v36 }
 0x281   :  { %v265_v40 = vadd.f32 %v264_v38, %v263_v35  ;;  %v275_v41 = vrot.slane %v274_v39, 4 }
 0x283   :  { %v266_v42 = vrot.slane %v265_v40, 2  ;;  %v276_v43 = vadd.f32 %v275_v41, %v274_v39 }
 0x285   :  { %v267_v44 = vadd.f32 %v266_v42, %v265_v40  ;;  %v277_v45 = vrot.slane %v276_v43, 2 }
 0x287   :  { %v268_v46 = vrot.slane %v267_v44, 1  ;;  %v278_v47 = vadd.f32 %v277_v45, %v276_v43 }
 0x289   :  { %v269_v48 = vadd.f32 %v268_v46, %v267_v44  ;;  %v279_v49 = vrot.slane %v278_v47, 1 }
 0x28b   :  { %v280_v50 = vadd.f32 %v279_v49, %v278_v47  ;;  %v281_v51 = vmul.f32 0.0625, %v269_v48  ;;  %v444_v49 = vld [vmem:[%s1000_s10] sm:$0x1] }
 0x28d   :  { %v282_v52 = vmul.f32 0.0625, %v280_v50  ;;  %v283_v53 = vmul.f32 %v281_v51, %v281_v51 }
 0x28f   :  { %v284_v54 = vsub.f32 %v282_v52, %v283_v53  ;;  %v448_v52 = vld [vmem:[%s1001_s11] sm:$0x1] }
 0x291   :  { %v286_v55 = vadd.f32 1e-05, %v284_v54 }
 0x293   :  { %717 = vrsqrt.f32 %v286_v55 }
 0x2a0   :  { %v718_v60 = vpop.eup %717 }
 0x2a1   :  { %v288_v61 = vmul.f32 %v718_v60, %v285_v58 }
 0x2a3   :  { %v290_v63 = vmul.f32 %v288_v61, %v281_v51  ;;  %v296_v1 = vrot.slane %v288_v61, %v939_v59 }
 0x2a5   :  { %v291_v2 = vsub.f32 %v289_v62, %v290_v63  ;;  %v298_v3 = vmul.f32 %v296_v1, %v255_v26  ;;  %v299_v4 = vmul.f32 %v296_v1, %v258_v30  ;;  %v716_v63 = vld [vmem:[%s1004_s14] sm:$0xff]   ;;  %s791_s14 = smov [#allocation7]  }
 0x2a6   :  { %v630_v1 = vld [vmem:[%s1003_s13] ss:$0 sm:$0xff]  ;;  %s604_s4 = sshll.u32 %s791_s14, 4  ;;  %s605_s4 = int_to_ptr.vmem [resolvable:$true] %s604_s4 }
 0x2a7   :  { %v304_v5 = vrot.slane %v291_v2, %v939_v59  ;;  %s761_s13 = scalar_lea.vmem %s605_s4, 256  ;;  %p766_p11 = scmp.lt.s32.totalorder %s605_s4, %s605_s4 }
 0x2a8   :  { %p762_p10 = scmp.ne.s32.totalorder %s605_s4, %s761_s13  ;;  %p767_p12 = scmp.lt.s32.totalorder %s761_s13, %s761_s13 }
 0x2a9   :  { %v306_v6 = vadd.f32 %v304_v5, %v298_v3  ;;  %v307_v7 = vadd.f32 %v304_v5, %v299_v4 }
 0x2aa   :  { %p768_p13 = por %p767_p12, %p766_p11 }
 0x2ab   :  { %v308_v8 = vmax.f32 %v306_v6, 0.0  ;;  %v309_v9 = vmax.f32 %v307_v7, 0.0 }
 0x2ac   :  { %p769_p0 = pnand %p768_p13, %p762_p10 }
 0x2ad   :  { %v310_v10 = vpack.c.bf16 %v309_v9, %v308_v8 }
 0x2af   :  { %679 = vmatmul.mubr.msk.bf16.vlgmr.msra.gmra.mxu1 %vm158_vm3, %v310_v10  ;;  %v634_v10 = vld [vmem:[%s1005_s15] ss:$0 sm:$0xff] }
 0x2b0   :  { %692 = vmatprep.mubr.msk.bf16.mxu1 %vm790_vm0, %v789_v0  ;;  %689 = vmatpush3.bf16.msra.mxu1 %v714_v16 }
 0x2b1   :  { %690 = vmatprep.subr.bf16.mxu1 %v789_v0 }
 0x2b4   :  { %691 = vmatpush3.bf16.msra.mxu1 %v715_v17 }
 0x36f   :  { %v364_v11 = vpop.f32.mrf.mxu1 }
 0x371   :  { %v680_v12 = vpop.f32.mrf.mxu1 }
 0x373   :  { %v367_v13 = vpop.f32.mrf.mxu1 }
 0x374   :  { %v371_v14 = vpack.c.bf16 %v367_v13, %v364_v11 }
 0x375   :  { %v681_v15 = vpop.f32.mrf.mxu1 }
 0x376   :  { %683 = vmatpush3.bf16.msra.mxu0 %v371_v14 }
 0x377   :  { %696 = vmatprep.subr.bf16.mxu0 %v789_v0 }
 0x379   :  { %685 = vmatmul.mubr.msk.bf16.vlgmr.msra.gmra.mxu0 %vm216_vm4, %v917_v21 }
 0x37a   :  { %698 = vmatprep.mubr.msk.bf16.mxu0 %vm790_vm0, %v789_v0  ;;  %697 = vmatpush3.bf16.msra.mxu0 %v716_v63 }
 0x439   :  { %v413_v19 = vpop.f32.mrf.mxu0 }
 0x43a   :  { %v414_v20 = vadd.f32 %v628_v18, %v413_v19 }
 0x43b   :  { %v686_v21 = vpop.f32.mrf.mxu0 }
 0x43c   :  { %v429_v23 = vmul.f32 %v414_v20, %v414_v20  ;;  %v420_v26 = vsel %vm158_vm3, %v414_v20, 0.0 }
 0x43d   :  { %v416_v22 = vpop.f32.mrf.mxu0 }
 0x43e   :  { %v417_v24 = vadd.f32 %v628_v18, %v416_v22  ;;  %v431_v29 = vsel %vm158_vm3, %v429_v23, 0.0 }
 0x43f   :  { %v687_v25 = vpop.f32.mrf.mxu0 }
 0x440   :  { %v421_v0 = vsel %vm158_vm3, %v417_v24, 0.0  ;;  %v430_v27 = vmul.f32 %v417_v24, %v417_v24 }
 0x441   :  { %v422_v28 = vadd.f32 %v421_v0, %v420_v26 }
 0x442   :  { %v432_v30 = vsel %vm158_vm3, %v430_v27, 0.0 }
 0x443   :  { %v423_v31 = vrot.slane %v422_v28, 4  ;;  %v433_v32 = vadd.f32 %v432_v30, %v431_v29 }
 0x445   :  { %v424_v33 = vadd.f32 %v423_v31, %v422_v28  ;;  %v434_v34 = vrot.slane %v433_v32, 4 }
 0x447   :  { %v425_v35 = vrot.slane %v424_v33, 2  ;;  %v435_v36 = vadd.f32 %v434_v34, %v433_v32 }
 0x449   :  { %v426_v37 = vadd.f32 %v425_v35, %v424_v33  ;;  %v436_v38 = vrot.slane %v435_v36, 2 }
 0x44b   :  { %v427_v39 = vrot.slane %v426_v37, 1  ;;  %v437_v40 = vadd.f32 %v436_v38, %v435_v36 }
 0x44d   :  { %v428_v41 = vadd.f32 %v427_v39, %v426_v37  ;;  %v438_v42 = vrot.slane %v437_v40, 1 }
 0x44f   :  { %v439_v43 = vadd.f32 %v438_v42, %v437_v40  ;;  %v440_v44 = vmul.f32 0.0625, %v428_v41 }
 0x451   :  { %v441_v45 = vmul.f32 0.0625, %v439_v43  ;;  %v442_v46 = vmul.f32 %v440_v44, %v440_v44 }
 0x453   :  { %v443_v47 = vsub.f32 %v441_v45, %v442_v46 }
 0x455   :  { %v445_v48 = vadd.f32 1e-05, %v443_v47 }
 0x457   :  { %719 = vrsqrt.f32 %v445_v48 }
 0x464   :  { %v720_v50 = vpop.eup %719 }
 0x465   :  { %v447_v51 = vmul.f32 %v720_v50, %v444_v49 }
 0x467   :  { %v449_v53 = vmul.f32 %v447_v51, %v440_v44  ;;  %v455_v54 = vrot.slane %v447_v51, %v939_v59 }
 0x469   :  { %v450_v55 = vsub.f32 %v448_v52, %v449_v53  ;;  %v457_v56 = vmul.f32 %v455_v54, %v414_v20  ;;  %v458_v57 = vmul.f32 %v455_v54, %v417_v24 }
 0x46b   :  { %v463_v58 = vrot.slane %v450_v55, %v939_v59 }
 0x46d   :  { %v465_v60 = vadd.f32 %v463_v58, %v457_v56  ;;  %v466_v61 = vadd.f32 %v463_v58, %v458_v57 }
 0x46f   :  { %v467_v62 = vpack.c.bf16 %v466_v61, %v465_v60 }
 0x471   :  { %693 = vmatmul.mubr.msk.bf16.vlgmr.msra.gmra.mxu1 %vm158_vm3, %v467_v62 }
 0x531   :  { %v528_v2 = vpop.f32.mrf.mxu1 }
 0x532   :  { %v529_v4 = vadd.f32 %v630_v1, %v528_v2 }
 0x533   :  { %v694_v3 = vpop.f32.mrf.mxu1 }
 0x534   :  { %v535_v7 = vmax.f32 %v529_v4, 0.0 }
 0x535   :  { %v531_v5 = vpop.f32.mrf.mxu1 }
 0x536   :  { %v532_v6 = vadd.f32 %v630_v1, %v531_v5 }
 0x537   :  { %v695_v59 = vpop.f32.mrf.mxu1 }
 0x538   :  { %v536_v8 = vmax.f32 %v532_v6, 0.0 }
 0x53a   :  { %v537_v9 = vpack.c.bf16 %v536_v8, %v535_v7 }
 0x53c   :  { %699 = vmatmul.mubr.msk.bf16.vlgmr.msra.gmra.mxu0 %vm216_vm4, %v537_v9 }
 0x5fc   :  { %v590_v11 = vpop.f32.mrf.mxu0 }
 0x5fd   :  { %v591_v12 = vadd.f32 %v634_v10, %v590_v11 }
 0x5fe   :  { %v700_v13 = vpop.f32.mrf.mxu0 }
 0x5ff   :  { %597 = vst [vmem:[#allocation7] sm:$0xff] %v591_v12 }
 0x600   :  { %v593_v14 = vpop.f32.mrf.mxu0 }
 0x601   :  { %v594_v15 = vadd.f32 %v634_v10, %v593_v14 }
 0x602   :  { %v701_v16 = vpop.f32.mrf.mxu0 }
 0x603   :  { %598 = vst [vmem:[#allocation7 + $0x8] sm:$0xff] %v594_v15 }
 0x604   :  { %772 = shalt.err (!%p769_p0)
}
 0x605   :  { %s792_s24 = smov 128   ;;  %s793_s15 = smov 8  }
 0x606   :  { %610 = dma.vmem_to_hbm [thread:$0]  %s605_s4, 256, %s1006_s16, [#allocation4], %s792_s24, %s792_s24, %s793_s15  }
 0x607   :  { %785 = dma.done.wait [#allocation4], 256  }
 0x608   :  { %786 = vsyncadd [#allocation4], 4294967040 }
 0x609   :  { %614 = vsyncpa [#allocation3], 1 }
 0x60a   :  { %615 = vsyncpa [#allocation6], 1 }
 0x60b   :  { %616 = vsyncpa [#allocation4], 1 }

</bundles_post_ra>
